<compile_context>
chip_gen: v6e
topology: v6e:2x2x1
jax: 0.10.0
libtpu: 0.0.40
codegen_flags: <defaults>
</compile_context>

<pallas_src>
import functools

import jax
import jax.numpy as jnp
import numpy as np
from jax import lax
from jax.experimental import pallas as pl
from jax.experimental.pallas import tpu as pltpu


def _round_up(x, m):
    return (x + m - 1) // m * m


def _cdiv(a, b):
    return (a + b - 1) // b


def _vmem_capacity_bytes(default=64 << 20):
    """Generation-aware VMEM capacity; conservative (v7x) fallback."""
    try:
        cap = int(getattr(pltpu.get_tpu_info(), "vmem_capacity_bytes"))
        if cap > 0:
            return cap
    except Exception:
        pass
    return default


def _choose_b_blk(B, c_in, max_rows=1024):
    """Batch block: divisor of B, prefer >=2 grid steps (v7x megacore) and
    8-aligned row counts (dense sublanes) when both are possible."""
    divs = [d for d in range(1, B + 1) if B % d == 0 and d * c_in <= max_rows]
    if not divs:
        divs = [1]
    pool = [d for d in divs if B // d >= 2] or divs      # megacore first
    aligned = [d for d in pool if (d * c_in) % 8 == 0]
    return max(aligned) if aligned else max(pool)


def _pick_hw_blk(rows_blk, hw, per_tile_budget, itemsize):
    """Spatial tile (lanes): multiple of 128, single tile <= per_tile_budget."""
    rows_pad = max(_round_up(rows_blk, 8), 8)
    bytes_per_lane = itemsize * rows_pad
    max_lanes = max(128, (per_tile_budget // bytes_per_lane) // 128 * 128)
    return int(min(max_lanes, _round_up(hw, 128), 32768))


def _mask_block_kernel(x_ref, w1_ref, w2_ref, b2_ref, out_ref, acc_ref, *,
                       inv_hw, thr_idx, c_in, c_mid, c_out, b_blk,
                       hw, hw_blk, ragged, slab_pad):
    h = pl.program_id(1)
    last = pl.num_programs(1) - 1

    # ---- pooled-sum accumulation (pipelined over the spatial grid axis) ----
    @pl.when(h == 0)
    def _():
        acc_ref[...] = jnp.zeros_like(acc_ref)

    x = x_ref[...].astype(jnp.float32)                  # (rows_blk, hw_blk)

    def _accumulate(xv):
        # Lane-wise tree of VPU adds; cross-lane reduce deferred to epilogue.
        chunks = [xv[:, k * 128:(k + 1) * 128] for k in range(hw_blk // 128)]
        while len(chunks) > 1:
            nxt = [chunks[i] + chunks[i + 1]
                   for i in range(0, len(chunks) - 1, 2)]
            if len(chunks) % 2:
                nxt.append(chunks[-1])
            chunks = nxt
        acc_ref[...] += chunks[0]

    if ragged:
        @pl.when(h < last)
        def _():
            _accumulate(x)

        @pl.when(h == last)
        def _():
            # Zero the out-of-range lanes of the final partial block before
            # accumulating (the DMA'd tail is undefined, never trusted).
            lane = lax.broadcasted_iota(jnp.int32, x.shape, dimension=1)
            _accumulate(jnp.where(lane < (hw - h * hw_blk), x, 0.0))
    else:
        _accumulate(x)

    # ---- epilogue: FCs + sigmoid + top-70% mask, once per batch block ----
    @pl.when(h == last)
    def _():
        w1 = w1_ref[...]                                # (C_in, C_mid)

        # fc1 (no bias) + ReLU.  Per-channel pooled columns are read straight
        # from the accumulator with a strided sublane slice; the unrolled VPU
        # multiply-add avoids a padded MXU pass for modest C_in.
        if c_in <= 128:
            y = None
            for c in range(c_in):
                rows_c = acc_ref[pl.ds(c, b_blk, stride=c_in), :]   # (B_blk,128)
                col = jnp.sum(rows_c, axis=-1, keepdims=True) * inv_hw
                term = col * w1[c:c + 1, :]                         # (B_blk,C_mid)
                y = term if y is None else y + term
        else:
            # TODO(synk): for very wide C_in a dedicated layout (or second tiny
            # pallas_call) would avoid this in-kernel sublane->lane reshape.
            pooled = jnp.sum(acc_ref[...], axis=-1, keepdims=True) * inv_hw
            y = jnp.dot(pooled.reshape(b_blk, c_in), w1,
                        preferred_element_type=jnp.float32)
        y = jnp.maximum(y, 0.0)

        # fc2 (+ bias): MXU when the contraction is big enough.
        if c_mid <= 16:
            w2 = w2_ref[...]
            z = None
            for c in range(c_mid):
                term = y[:, c:c + 1] * w2[c:c + 1, :]
                z = term if z is None else z + term
        else:
            z = jnp.dot(y, w2_ref[...], preferred_element_type=jnp.float32)
        z = z + b2_ref[...]

        # sigmoid (f32; exp on the EUP).
        mask_before = 1.0 / (1.0 + jnp.exp(-z))          # (B_blk, C_out)

        # _lasso = mean over channels
        lasso = jnp.mean(mask_before, axis=-1, keepdims=True)

        # Threshold = value at descending-sorted index thr_idx; mask = v > thred.
        # Sort-free, tie-exact form:  v > thred  <=>  #{k: v_k >= v} <= thr_idx.
        # (For C_out >> 128, compute the rank counts blockwise instead of
        #  materializing the (B_blk, C, C) broadcast.)
        ge = (mask_before[:, None, :] >= mask_before[:, :, None]).astype(jnp.float32)
        counts = jnp.sum(ge, axis=-1)                    # (B_blk, C_out)
        mask = (counts <= float(thr_idx)).astype(jnp.float32)

        # One lane-dense slab -> single unmasked store + single writeback DMA.
        parts = [mask_before * mask,                                  # masked_score
                 mask_before,                                         # mask_before
                 mask,                                                # mask
                 jnp.broadcast_to(lasso, (b_blk, c_out))]             # lasso bcast
        if slab_pad:
            parts.append(jnp.zeros((b_blk, slab_pad), jnp.float32))
        out_ref[...] = jnp.concatenate(parts, axis=-1).astype(out_ref.dtype)


def mask_block_forward(x_nchw, w1_t, w2_t, b2, *, hw_blk=None, b_blk=None):
    """x_nchw: (B, C_in, H, W); w1_t: (C_in, C_mid); w2_t: (C_mid, C_out); b2: (C_out,).

    Returns (masked_score, _lasso, mask_before, mask) matching the PyTorch forward.
    """
    B, C_in, H, W = x_nchw.shape
    HW = H * W
    C_mid = w1_t.shape[1]
    C_out = w2_t.shape[1]
    thr_idx = int(C_out * 0.7)          # same index as torch: score[:, int(C_out*0.7)]
    slab_w = _round_up(4 * C_out, 128)  # lane-dense (unmasked) output store
    slab_pad = slab_w - 4 * C_out

    vmem_cap = _vmem_capacity_bytes()

    # Batch tiling: leading ("parallel") grid axis.
    if b_blk is None:
        b_blk = _choose_b_blk(B, C_in)
    assert B % b_blk == 0
    n_b = B // b_blk
    rows_blk = b_blk * C_in

    # Spatial tiling: trailing ("arbitrary") reduction axis, multiple of 128
    # lanes, sized so the double-buffered x tile targets ~VMEM/4.
    itemsize = jnp.dtype(x_nchw.dtype).itemsize
    if hw_blk is None:
        hw_blk = _pick_hw_blk(rows_blk, HW, per_tile_budget=vmem_cap // 8,
                              itemsize=itemsize)
    assert hw_blk % 128 == 0, "hw_blk must be a multiple of 128 lanes"
    n_hw = _cdiv(HW, hw_blk)
    ragged = (HW % hw_blk) != 0

    # Contiguous, metadata-only reshape: no pad copy, no dtype copy of x.
    x3 = x_nchw.reshape(n_b, rows_blk, HW)
    b2_2d = b2.reshape(1, C_out).astype(jnp.float32)

    kernel = functools.partial(
        _mask_block_kernel, inv_hw=1.0 / float(HW), thr_idx=thr_idx,
        c_in=C_in, c_mid=C_mid, c_out=C_out, b_blk=b_blk,
        hw=HW, hw_blk=hw_blk, ragged=ragged, slab_pad=slab_pad)

    # Generation-aware VMEM budget: double-buffered x tile + weights/out/acc.
    rows_pad = max(_round_up(rows_blk, 8), 8)
    x_tile_bytes = rows_pad * hw_blk * itemsize
    fixed_bytes = ((C_in * C_mid + C_mid * C_out + C_out + b_blk * slab_w) * 4
                   + rows_pad * 128 * 4)
    needed = 2 * x_tile_bytes + 2 * fixed_bytes + (2 << 20)
    vmem_limit = int(min(vmem_cap - (2 << 20), max(needed, 16 << 20)))

    slab = pl.pallas_call(
        kernel,
        out_shape=jax.ShapeDtypeStruct((n_b, b_blk, slab_w), jnp.float32),
        grid=(n_b, n_hw),
        in_specs=[
            pl.BlockSpec((None, rows_blk, hw_blk), lambda b, h: (b, 0, h)),
            pl.BlockSpec((C_in, C_mid), lambda b, h: (0, 0)),
            pl.BlockSpec((C_mid, C_out), lambda b, h: (0, 0)),
            pl.BlockSpec((1, C_out), lambda b, h: (0, 0)),
        ],
        out_specs=pl.BlockSpec((None, b_blk, slab_w), lambda b, h: (b, 0, 0)),
        scratch_shapes=[pltpu.VMEM((rows_blk, 128), jnp.float32)],
        compiler_params=pltpu.CompilerParams(
            dimension_semantics=("parallel", "arbitrary"),
            vmem_limit_bytes=vmem_limit),
    )(x3, w1_t.astype(jnp.float32), w2_t.astype(jnp.float32), b2_2d)

    slab = slab.reshape(B, slab_w)
    masked_score = slab[:, 0:C_out]
    mask_before = slab[:, C_out:2 * C_out]
    mask = slab[:, 2 * C_out:3 * C_out]
    lasso = slab[:, 3 * C_out]
    return masked_score, lasso, mask_before, mask


def _reference_forward(x_nchw, w1_t, w2_t, b2):
    """Pure-JAX reference mirroring the PyTorch forward (actual sort)."""
    B = x_nchw.shape[0]
    C_out = w2_t.shape[1]
    x_avg = jnp.mean(x_nchw.astype(jnp.float32), axis=(2, 3))
    y = jnp.maximum(x_avg @ w1_t, 0.0)
    y = y @ w2_t + b2[None, :]
    mb = jax.nn.sigmoid(y)
    lasso = jnp.mean(mb, axis=-1)
    score = -jnp.sort(-mb, axis=-1)                       # descending
    thred = score[:, int(C_out * 0.7)].reshape(B, 1)
    mask = (mb > thred).astype(jnp.float32)
    return mb * mask, lasso, mb, mask, thred


def _check(outs, ref, tag):
    ms, lasso, mb, mask = [np.asarray(o) for o in outs]
    r_ms, r_lasso, r_mb, r_mask, r_thred = [np.asarray(r) for r in ref]
    np.testing.assert_allclose(mb, r_mb, rtol=1e-5, atol=1e-5, err_msg=tag)
    np.testing.assert_allclose(lasso, r_lasso, rtol=1e-5, atol=1e-5, err_msg=tag)
    # Mask equality, except within an ulp-ish band of the threshold (EUP exp
    # in-kernel vs XLA exp in the reference can straddle it).
    near = np.abs(r_mb - r_thred) <= 1e-5
    assert np.all((mask == r_mask) | near), f"{tag}: mask mismatch away from threshold"
    np.testing.assert_allclose(np.where(near, 0.0, ms), np.where(near, 0.0, r_ms),
                               rtol=1e-5, atol=1e-5, err_msg=tag)
    np.testing.assert_allclose(ms, mb * mask, rtol=1e-6, atol=1e-6, err_msg=tag)


if __name__ == "__main__":
    key = jax.random.PRNGKey(0)

    def make_case(k, B, C_in, H, W, C_out):
        squeeze_rate = 1 if C_out < 80 else 2
        C_mid = C_out // squeeze_rate
        kx, k1, k2 = jax.random.split(k, 3)
        x = jax.random.normal(kx, (B, C_in, H, W), dtype=jnp.float32)
        # kaiming_normal_-style init (fan_in, gain=sqrt(2)); fc2 bias = 1.0.
        w1 = jax.random.normal(k1, (C_mid, C_in), dtype=jnp.float32) * np.sqrt(2.0 / C_in)
        w2 = jax.random.normal(k2, (C_out, C_mid), dtype=jnp.float32) * np.sqrt(2.0 / C_mid)
        b2 = jnp.ones((C_out,), dtype=jnp.float32)
        return x, w1.T, w2.T, b2            # weights pre-transposed: kernel does x @ W

    k1_, k2_ = jax.random.split(key)

    # Case 1: module-consistent toy shapes (B=2, C_in=4, 16x16, C_out=32).
    # hw_blk=128 forces a 2-step spatial grid so the pipelined-accumulator
    # path (pl.when init / epilogue) is exercised even at toy sizes.
    x, w1_t, w2_t, b2 = make_case(k1_, B=2, C_in=4, H=16, W=16, C_out=32)
    outs = jax.block_until_ready(mask_block_forward(x, w1_t, w2_t, b2, hw_blk=128))
    _check(outs, _reference_forward(x, w1_t, w2_t, b2), "case1")

    # Case 2: ragged spatial tail (15*15=225), batch split (B=4 -> two blocks
    # of 2) and a lane-padded output slab (4*24=96 -> 128 lanes).
    x, w1_t, w2_t, b2 = make_case(k2_, B=4, C_in=4, H=15, W=15, C_out=24)
    outs = jax.block_until_ready(mask_block_forward(x, w1_t, w2_t, b2, hw_blk=128))
    _check(outs, _reference_forward(x, w1_t, w2_t, b2), "case2")

    print("KERNEL_OK")
</pallas_src>

<mosaic_0001>
module attributes {stable_mosaic.version = 11 : i64} {
  func.func @_mask_block_kernel(%arg0: i32, %arg1: i32, %arg2: memref<1x4x128xf32, #tpu.memory_space<vmem>>, %arg3: memref<4x32xf32, #tpu.memory_space<vmem>>, %arg4: memref<32x32xf32, #tpu.memory_space<vmem>>, %arg5: memref<1x32xf32, #tpu.memory_space<vmem>>, %arg6: memref<1x1x128xf32, #tpu.memory_space<vmem>>, %arg7: memref<4x128xf32, #tpu.memory_space<vmem>>) attributes {dimension_semantics = [#tpu.dimension_semantics<parallel>, #tpu.dimension_semantics<arbitrary>], iteration_bounds = array<i64: 2, 2>, scalar_prefetch = 0 : i64, scratch_operands = 1 : i64, tpu.core_type = #tpu.core_type<tc>, window_params = [{transform_indices = @transform_0, window_bounds = array<i64: 1, 4, 128>}, {pipeline_mode = #tpu.pipeline_mode<synchronous>, transform_indices = @transform_1, window_bounds = array<i64: 4, 32>}, {pipeline_mode = #tpu.pipeline_mode<synchronous>, transform_indices = @transform_2, window_bounds = array<i64: 32, 32>}, {pipeline_mode = #tpu.pipeline_mode<synchronous>, transform_indices = @transform_3, window_bounds = array<i64: 1, 32>}, {transform_indices = @transform_4, window_bounds = array<i64: 1, 1, 128>}]} {
    %c0_i32 = arith.constant 0 : i32
    %0 = arith.cmpi eq, %arg1, %c0_i32 : i32
    %1 = arith.extui %0 : i1 to i32
    %c0_i32_0 = arith.constant 0 : i32
    %2 = arith.cmpi ne, %1, %c0_i32_0 : i32
    scf.if %2 {
      %cst = arith.constant 0.000000e+00 : f32
      %11 = vector.broadcast %cst : f32 to vector<4x128xf32>
      %c0_8 = arith.constant 0 : index
      %c0_9 = arith.constant 0 : index
      %12 = vector.load %arg7[%c0_8, %c0_9] : memref<4x128xf32, #tpu.memory_space<vmem>>, vector<4x128xf32>
      tpu.vector_store %arg7[%c0_8, %c0_9], %11 {strides = array<i32>} : memref<4x128xf32, #tpu.memory_space<vmem>>, vector<4x128xf32>,
    } else {
    }
    %c0 = arith.constant 0 : index
    %c0_1 = arith.constant 0 : index
    %c0_2 = arith.constant 0 : index
    %3 = vector.load %arg2[%c0, %c0_1, %c0_2] : memref<1x4x128xf32, #tpu.memory_space<vmem>>, vector<1x4x128xf32>
    %4 = vector.shape_cast %3 : vector<1x4x128xf32> to vector<4x128xf32>
    %c0_3 = arith.constant 0 : index
    %c0_4 = arith.constant 0 : index
    %5 = vector.load %arg7[%c0_3, %c0_4] : memref<4x128xf32, #tpu.memory_space<vmem>>, vector<4x128xf32>
    %6 = arith.addf %5, %4 : vector<4x128xf32>
    %c0_5 = arith.constant 0 : index
    %c0_6 = arith.constant 0 : index
    %7 = vector.load %arg7[%c0_5, %c0_6] : memref<4x128xf32, #tpu.memory_space<vmem>>, vector<4x128xf32>
    tpu.vector_store %arg7[%c0_5, %c0_6], %6 {strides = array<i32>} : memref<4x128xf32, #tpu.memory_space<vmem>>, vector<4x128xf32>,
    %c1_i32 = arith.constant 1 : i32
    %8 = arith.cmpi eq, %arg1, %c1_i32 : i32
    %9 = arith.extui %8 : i1 to i32
    %c0_i32_7 = arith.constant 0 : i32
    %10 = arith.cmpi ne, %9, %c0_i32_7 : i32
    scf.if %10 {
      %c0_8 = arith.constant 0 : index
      %c0_9 = arith.constant 0 : index
      %11 = vector.load %arg3[%c0_8, %c0_9] : memref<4x32xf32, #tpu.memory_space<vmem>>, vector<4x32xf32>
      %c0_10 = arith.constant 0 : index
      %c0_11 = arith.constant 0 : index
      %12 = tpu.strided_load %arg7[%c0_10, %c0_11] {strides = array<i32: 4, 1>} : memref<4x128xf32, #tpu.memory_space<vmem>>, vector<1x128xf32>
      %cst = arith.constant dense<0.000000e+00> : vector<1xf32>
      %13 = vector.multi_reduction <add>, %12, %cst [1] : vector<1x128xf32> to vector<1xf32>
      %14 = vector.shape_cast %13 : vector<1xf32> to vector<1x1xf32>
      %cst_12 = arith.constant 3.906250e-03 : f32
      %15 = vector.broadcast %cst_12 : f32 to vector<1x1xf32>
      %16 = arith.mulf %14, %15 : vector<1x1xf32>
      %17 = vector.extract_strided_slice %11 {offsets = [0, 0], sizes = [1, 32], strides = [1, 1]} : vector<4x32xf32> to vector<1x32xf32>
      %18 = vector.broadcast %16 : vector<1x1xf32> to vector<1x32xf32>
      %19 = arith.mulf %18, %17 : vector<1x32xf32>
      %c1 = arith.constant 1 : index
      %c0_13 = arith.constant 0 : index
      %20 = tpu.strided_load %arg7[%c1, %c0_13] {strides = array<i32: 4, 1>} : memref<4x128xf32, #tpu.memory_space<vmem>>, vector<1x128xf32>
      %cst_14 = arith.constant dense<0.000000e+00> : vector<1xf32>
      %21 = vector.multi_reduction <add>, %20, %cst_14 [1] : vector<1x128xf32> to vector<1xf32>
      %22 = vector.shape_cast %21 : vector<1xf32> to vector<1x1xf32>
      %cst_15 = arith.constant 3.906250e-03 : f32
      %23 = vector.broadcast %cst_15 : f32 to vector<1x1xf32>
      %24 = arith.mulf %22, %23 : vector<1x1xf32>
      %25 = vector.extract_strided_slice %11 {offsets = [1, 0], sizes = [1, 32], strides = [1, 1]} : vector<4x32xf32> to vector<1x32xf32>
      %26 = vector.broadcast %24 : vector<1x1xf32> to vector<1x32xf32>
      %27 = arith.mulf %26, %25 : vector<1x32xf32>
      %28 = arith.addf %19, %27 : vector<1x32xf32>
      %c2 = arith.constant 2 : index
      %c0_16 = arith.constant 0 : index
      %29 = tpu.strided_load %arg7[%c2, %c0_16] {strides = array<i32: 4, 1>} : memref<4x128xf32, #tpu.memory_space<vmem>>, vector<1x128xf32>
      %cst_17 = arith.constant dense<0.000000e+00> : vector<1xf32>
      %30 = vector.multi_reduction <add>, %29, %cst_17 [1] : vector<1x128xf32> to vector<1xf32>
      %31 = vector.shape_cast %30 : vector<1xf32> to vector<1x1xf32>
      %cst_18 = arith.constant 3.906250e-03 : f32
      %32 = vector.broadcast %cst_18 : f32 to vector<1x1xf32>
      %33 = arith.mulf %31, %32 : vector<1x1xf32>
      %34 = vector.extract_strided_slice %11 {offsets = [2, 0], sizes = [1, 32], strides = [1, 1]} : vector<4x32xf32> to vector<1x32xf32>
      %35 = vector.broadcast %33 : vector<1x1xf32> to vector<1x32xf32>
      %36 = arith.mulf %35, %34 : vector<1x32xf32>
      %37 = arith.addf %28, %36 : vector<1x32xf32>
      %c3 = arith.constant 3 : index
      %c0_19 = arith.constant 0 : index
      %38 = tpu.strided_load %arg7[%c3, %c0_19] {strides = array<i32: 4, 1>} : memref<4x128xf32, #tpu.memory_space<vmem>>, vector<1x128xf32>
      %cst_20 = arith.constant dense<0.000000e+00> : vector<1xf32>
      %39 = vector.multi_reduction <add>, %38, %cst_20 [1] : vector<1x128xf32> to vector<1xf32>
      %40 = vector.shape_cast %39 : vector<1xf32> to vector<1x1xf32>
      %cst_21 = arith.constant 3.906250e-03 : f32
      %41 = vector.broadcast %cst_21 : f32 to vector<1x1xf32>
      %42 = arith.mulf %40, %41 : vector<1x1xf32>
      %43 = vector.extract_strided_slice %11 {offsets = [3, 0], sizes = [1, 32], strides = [1, 1]} : vector<4x32xf32> to vector<1x32xf32>
      %44 = vector.broadcast %42 : vector<1x1xf32> to vector<1x32xf32>
      %45 = arith.mulf %44, %43 : vector<1x32xf32>
      %46 = arith.addf %37, %45 : vector<1x32xf32>
      %cst_22 = arith.constant 0.000000e+00 : f32
      %47 = vector.broadcast %cst_22 : f32 to vector<1x32xf32>
      %48 = arith.maximumf %46, %47 : vector<1x32xf32>
      %c0_23 = arith.constant 0 : index
      %c0_24 = arith.constant 0 : index
      %49 = vector.load %arg4[%c0_23, %c0_24] : memref<32x32xf32, #tpu.memory_space<vmem>>, vector<32x32xf32>
      %cst_25 = arith.constant dense<0.000000e+00> : vector<1x32xf32>
      %50 = tpu.matmul %48, %49, %cst_25 {dimension_numbers = #tpu.dot_dimension_numbers<[1], [0], [0], [1], [0, 0, 1, 1], [], []>} : vector<1x32xf32>, vector<32x32xf32>, vector<1x32xf32> -> vector<1x32xf32>
      %c0_26 = arith.constant 0 : index
      %c0_27 = arith.constant 0 : index
      %51 = vector.load %arg5[%c0_26, %c0_27] : memref<1x32xf32, #tpu.memory_space<vmem>>, vector<1x32xf32>
      %52 = arith.addf %50, %51 : vector<1x32xf32>
      %cst_28 = arith.constant 0.000000e+00 : f32
      %53 = vector.broadcast %cst_28 : f32 to vector<1x32xf32>
      %54 = arith.subf %53, %52 : vector<1x32xf32>
      %55 = math.exp %54 : vector<1x32xf32>
      %cst_29 = arith.constant 1.000000e+00 : f32
      %56 = vector.broadcast %cst_29 : f32 to vector<1x32xf32>
      %57 = arith.addf %56, %55 : vector<1x32xf32>
      %cst_30 = arith.constant 1.000000e+00 : f32
      %58 = vector.broadcast %cst_30 : f32 to vector<1x32xf32>
      %59 = arith.divf %58, %57 : vector<1x32xf32>
      %cst_31 = arith.constant dense<0.000000e+00> : vector<1xf32>
      %60 = vector.multi_reduction <add>, %59, %cst_31 [1] : vector<1x32xf32> to vector<1xf32>
      %61 = vector.shape_cast %60 : vector<1xf32> to vector<1x1xf32>
      %cst_32 = arith.constant 3.200000e+01 : f32
      %62 = vector.broadcast %cst_32 : f32 to vector<1x1xf32>
      %63 = arith.divf %61, %62 : vector<1x1xf32>
      %64 = vector.shape_cast %59 : vector<1x32xf32> to vector<1x1x32xf32>
      %65 = vector.shape_cast %59 : vector<1x32xf32> to vector<1x32x1xf32>
      %66 = vector.broadcast %64 : vector<1x1x32xf32> to vector<1x32x32xf32>
      %67 = vector.broadcast %65 : vector<1x32x1xf32> to vector<1x32x32xf32>
      %68 = arith.cmpf oge, %66, %67 : vector<1x32x32xf32>
      %69 = arith.extui %68 : vector<1x32x32xi1> to vector<1x32x32xi32>
      %70 = arith.sitofp %69 : vector<1x32x32xi32> to vector<1x32x32xf32>
      %cst_33 = arith.constant dense<0.000000e+00> : vector<1x32xf32>
      %71 = vector.multi_reduction <add>, %70, %cst_33 [2] : vector<1x32x32xf32> to vector<1x32xf32>
      %cst_34 = arith.constant 2.200000e+01 : f32
      %72 = vector.broadcast %cst_34 : f32 to vector<1x32xf32>
      %73 = arith.cmpf ole, %71, %72 : vector<1x32xf32>
      %74 = arith.extui %73 : vector<1x32xi1> to vector<1x32xi32>
      %75 = arith.sitofp %74 : vector<1x32xi32> to vector<1x32xf32>
      %76 = arith.mulf %59, %75 : vector<1x32xf32>
      %77 = vector.shape_cast %63 : vector<1x1xf32> to vector<1x1xf32>
      %78 = vector.broadcast %77 : vector<1x1xf32> to vector<1x32xf32>
      %79 = tpu.concatenate %76, %59, %75, %78 in 1 : vector<1x32xf32>, vector<1x32xf32>, vector<1x32xf32>, vector<1x32xf32> -> vector<1x128xf32>
      %c0_35 = arith.constant 0 : index
      %c0_36 = arith.constant 0 : index
      %c0_37 = arith.constant 0 : index
      %80 = vector.load %arg6[%c0_35, %c0_36, %c0_37] : memref<1x1x128xf32, #tpu.memory_space<vmem>>, vector<1x1x128xf32>
      %81 = vector.shape_cast %80 : vector<1x1x128xf32> to vector<1x128xf32>
      %82 = vector.shape_cast %79 : vector<1x128xf32> to vector<1x1x128xf32>
      tpu.vector_store %arg6[%c0_35, %c0_36, %c0_37], %82 {strides = array<i32>} : memref<1x1x128xf32, #tpu.memory_space<vmem>>, vector<1x1x128xf32>,
    } else {
    }
    return
  }
  func.func @transform_0(%arg0: i32, %arg1: i32) -> (i32, i32, i32) {
    %c0_i32 = arith.constant 0 : i32
    %c0_i32_0 = arith.constant 0 : i32
    return %arg0, %c0_i32, %arg1 : i32, i32, i32
  }
  func.func @transform_1(%arg0: i32, %arg1: i32) -> (i32, i32) {
    %c0_i32 = arith.constant 0 : i32
    %c0_i32_0 = arith.constant 0 : i32
    %c0_i32_1 = arith.constant 0 : i32
    return %c0_i32, %c0_i32_0 : i32, i32
  }
  func.func @transform_2(%arg0: i32, %arg1: i32) -> (i32, i32) {
    %c0_i32 = arith.constant 0 : i32
    %c0_i32_0 = arith.constant 0 : i32
    %c0_i32_1 = arith.constant 0 : i32
    return %c0_i32, %c0_i32_0 : i32, i32
  }
  func.func @transform_3(%arg0: i32, %arg1: i32) -> (i32, i32) {
    %c0_i32 = arith.constant 0 : i32
    %c0_i32_0 = arith.constant 0 : i32
    %c0_i32_1 = arith.constant 0 : i32
    return %c0_i32, %c0_i32_0 : i32, i32
  }
  func.func @transform_4(%arg0: i32, %arg1: i32) -> (i32, i32, i32) {
    %c0_i32 = arith.constant 0 : i32
    %c0_i32_0 = arith.constant 0 : i32
    %c0_i32_1 = arith.constant 0 : i32
    return %arg0, %c0_i32, %c0_i32_0 : i32, i32, i32
  }
}

</mosaic_0001>

<bundles_post_ra>
// kernel: tpu_custom_call.1
= control target key start
LH: loop header
LB: loop body
LE: loop exit
PB: predicated region body
PF: predicated region fallthrough
CT: control target
= control target key end

     0   :  { %s1321_s0 = inlined_call_operand.hbm [shape: f32[2,4,256], index: 0, kind: input, shape index: {}]   ;;  %s1322_s1 = inlined_call_operand.hbm [shape: f32[4,32], index: 1, kind: input, shape index: {}]   ;;  %s1323_s2 = inlined_call_operand.hbm [shape: f32[32,32], index: 2, kind: input, shape index: {}]   ;;  %s1324_s3 = inlined_call_operand.vmem [shape: f32[1,32], index: 3, kind: input, shape index: {}]   ;;  %s1325_s4 = inlined_call_operand.hbm [shape: f32[2,1,128], index: 4, kind: output, shape index: {}]  }
   0x1   :  { %1337 = sst [smem:[#allocation18_spill]] %s1322_s1 }
   0x2   :  { %1338 = sst [smem:[#allocation19_spill]] %s1323_s2 }
   0x3   :  { %1339 = sst [smem:[#allocation20_spill]] %s1324_s3 }
   0x4   :  { %1340 = sst [smem:[#allocation21_spill]] %s1325_s4 }
   0x5   :  { %9 = vsyncpa [#allocation4], 0 }
   0x6   :  { %11 = vsyncpa [#allocation4 + $0x1], 0 }
   0x7   :  { %12 = vsyncpa [#allocation7], 0 }
   0x8   :  { %13 = vsyncpa [#allocation5], 0 }
   0x9   :  { %15 = vsyncpa [#allocation5 + $0x1], 0  ;;  %s1052_s15 = smov 0   ;;  %s1054_s16 = smov 0  }
   0xa   :  { %s1056_s17 = smov 0   ;;  %s1058_s18 = smov 0  }
   0xb   :  { %s1060_s19 = smov 0   ;;  %s1062_s20 = smov 0  }
   0xc   :  { %s1064_s21 = smov 0   ;;  %s1066_s22 = smov 0  }
   0xd   :  { %s1068_s23 = smov 0   ;;  %s1070_s24 = smov 0  }
   0xe   :  { %s1072_s25 = smov 0  }
   0xf LB: > { %1341 = sst [smem:[#allocation13_spill]] %s975_s15  ;;  %s635_s26 = sadd.s32 4294967295, %s1015_s25   ;;  %s1015_s25 = sphi %s1072_s25, %s21_s25   ;;  %s1011_s24 = sphi %s1070_s24, %s1377_s24   ;;  %s1007_s23 = sphi %s1068_s23, %s1376_s23   ;;  %s1003_s22 = sphi %s1066_s22, %s1375_s22   ;;  %s999_s21 = sphi %s1064_s21, %s1374_s21   ;;  %s995_s20 = sphi %s1062_s20, %s1373_s20   ;;  %s991_s19 = sphi %s1060_s19, %s1372_s19   ;;  %s987_s18 = sphi %s1058_s18, %s1371_s18   ;;  %s983_s17 = sphi %s1056_s17, %s1370_s17   ;;  %s979_s16 = sphi %s1054_s16, %s1369_s16   ;;  %s975_s15 = sphi %s1052_s15, %s1368_s15  }
  0x10   : > { %1342 = sst [smem:[#allocation14_spill]] %s1003_s22  ;;  %s636_s27 = sadd.s32 4294967294, %s1015_s25  }
  0x11   : > { %p55_p0 = scmp.ne.s32.totalorder %s991_s19, %s987_s18  ;;  %p1108_p1 = scmp.eq.s32.totalorder %s635_s26, 0 }
  0x12   : > { %p141_p2 = scmp.ne.s32.totalorder %s983_s17, %s979_s16  ;;  %p142_p3 = scmp.eq.s32.totalorder %s635_s26, 3 }
  0x13   : > { %s1343_s28 = scalar_select %p1108_p1, 1, 0 }
  0x14   : > { %p1116_p4 = por %p1108_p1, %p55_p0  ;;  %p147_p5 = scmp.ne.s32.totalorder %s979_s16, %s975_s15 }
  0x15   : > { %p1122_p6 = por %p142_p3, %p141_p2  ;;  %p148_p7 = scmp.eq.s32.totalorder %s636_s27, 3 }
  0x16   : > { %s1344_s29 = scalar_select %p1116_p4, 1, 0 }
  0x17   : > { %s1345_s30 = scalar_select %p1122_p6, 1, 0 }
  0x18   : > { %p637_p8 = scmp.ge.s32.totalorder %s1015_s25, 1  ;;  %p155_p9 = scmp.lt.s32.totalorder %s1015_s25, 5 }
  0x19   : > { %1346 = sst [smem:[#allocation15_spill]] %s1345_s30  ;;  %p1128_p10 = por %p148_p7, %p147_p5 }
  0x1a   : > { %p1132_p11 = pnand %p637_p8, %p155_p9  ;;  %s1017_s7 = smov [#allocation6]  }
  0x1b   : > { %s1347_s5 = scalar_select %p1128_p10, 1, 0 }
  0x1c   : > { %s1349_s6 = scalar_select %p1132_p11, 1, 0 }
  0x1d   : > { %1348 = sst [smem:[#allocation16_spill]] %s1347_s5  ;;  %s168_s8 = sshll.u32 %s1017_s7, 4  ;;  %s169_s8 = int_to_ptr.vmem [resolvable:$true] %s168_s8 }
  0x1e   : > { %p690_p12 = pneg %p1132_p11  ;;  %s1018_s10 = smov [#allocation8]  }
  0x1f   : > { %s178_s11 = sshll.u32 %s1018_s10, 4  ;;  %s822_s12 = scalar_lea.vmem %s169_s8, 64  ;;  %s179_s11 = int_to_ptr.vmem [resolvable:$true] %s178_s11 }
  0x20   : > { %p1140_p13 = pnand %p690_p12, %p1108_p1  ;;  %p823_p2 = scmp.ne.s32.totalorder %s169_s8, %s822_s12 }
  0x21   : > { %p830_p7 = scmp.lt.s32.totalorder %s169_s8, %s169_s8  ;;  %p831_p8 = scmp.lt.s32.totalorder %s822_s12, %s822_s12 }
  0x22   : > { %p813_p0 = pneg %p1140_p13 }
  0x23   : > { %p832_p9 = por %p831_p8, %p830_p7 }
  0x24   : > { %p825_p3 = pnand %p823_p2, %p813_p0 }
  0x26   : > { %p826_p5 = pneg %p825_p3 }
  0x28   : > { %p833_p12 = pnand %p832_p9, %p826_p5 }
  0x2a   : > { %836 = shalt.err (!%p833_p12)
}
  0x2b   : > { %s1351_s1 = sld [smem:[#allocation18_spill]]  ;;  %s848_s18 = scalar_lea.vmem %s179_s11, 512 }
  0x2c   : > { %p849_p10 = scmp.ne.s32.totalorder %s179_s11, %s848_s18  ;;  %p856_p2 = scmp.lt.s32.totalorder %s179_s11, %s179_s11 }
  0x2d   : > { %p857_p3 = scmp.lt.s32.totalorder %s848_s18, %s848_s18 }
  0x2e   : > { %p851_p6 = pnand %p849_p10, %p813_p0 }
  0x2f   : > { %p858_p4 = por %p857_p3, %p856_p2 }
  0x30   : > { %p852_p1 = pneg %p851_p6 }
  0x31   : > { %693 = dma.hbm_to_vmem [thread:$0]  (!%p1140_p13), %s1351_s1, 64, %s169_s8, [#allocation7]  }
  0x32   : > { %p859_p11 = pnand %p858_p4, %p852_p1 }
  0x34   : > { %862 = shalt.err (!%p859_p11)
}
  0x35   : > { %s1019_s26 = smov 128   ;;  %s1020_s27 = smov 8  }
  0x36   : > { %s1352_s2 = sld [smem:[#allocation19_spill]]  ;;  %s30_s10 = sadd.s32 1, %s1007_s23 }
  0x37   : > { %p31_p1 = scmp.ge.s32.totalorder %s30_s10, 2  ;;  %s33_s12 = sadd.s32 1, %s1011_s24 }
  0x38   : > { %p49_p4 = scmp.ne.s32.totalorder %s995_s20, %s991_s19  ;;  %s42_s13 = sadd.s32 1, %s995_s20 }
  0x39   : > { %s1379_s10 = smov (%p31_p1, %s30_s10), 0  ;;  %s1381_s12 = smov (!%p31_p1, %s33_s12), %s1011_s24 }
  0x3a   : > { %1353 = sst [smem:[#allocation17_spill]] %s1379_s10  ;;  %p50_p6 = scmp.eq.s32.totalorder %s1015_s25, 0 }
  0x3b   : > { %p35_p10 = scmp.ge.s32.totalorder %s1381_s12, 2  ;;  %s38_s9 = ssub.s32 %s1007_s23, %s1379_s10 }
  0x3c   : > { %696 = dma.hbm_to_vmem [thread:$0]  (!%p1140_p13), %s1352_s2, 512, %s179_s11, [#allocation7], %s1019_s26, %s1019_s26, %s1020_s27  }
  0x3d   : > { %p1173_p11 = por %p50_p6, %p49_p4  ;;  %s131_s11 = sadd.s32 1, %s983_s17 }
  0x3e   : > { %s1383_s12 = smov (%p35_p10, %s1381_s12), 0  ;;  %p707_p13 = scmp.lt.s32.totalorder %s1015_s25, 4 }
  0x3f   : > { %s195_s18 = sand.u32 1, %s995_s20   ;;  %s37_s26 = ssub.s32 %s1011_s24, %s1383_s12 }
  0x40   : > { %s642_s27 = sshll.u32 %s1011_s24, 1  ;;  %s39_s7 = sor.u32 %s38_s9, %s37_s26 }
  0x41   : > { %p129_p0 = scmp.eq.s32.totalorder %s37_s26, 0  ;;  %p40_p5 = scmp.eq.s32.totalorder %s39_s7, 0 }
  0x42   : > { %s641_s8 = sshll.u32 %s195_s18, 2  ;;  %s204_s10 = sadd.s32 %s1007_s23, %s642_s27 }
  0x43   : > { %s1186_s1 = scalar_select %p129_p0, %s983_s17, %s131_s11  }
  0x44   : > { %s1189_s2 = scalar_select %p40_p5, %s995_s20, %s42_s13  }
  0x45   : > { %s643_s5 = sshll.u32 %s204_s10, 6  ;;  %s199_s15 = scalar_lea.vmem [#allocation3], %s641_s8 }
  0x46   : > { %s208_s4 = sshll.u32 %s199_s15, 4  ;;  %s206_s3 = scalar_lea.hbm %s1321_s0, %s643_s5  ;;  %s209_s4 = int_to_ptr.vmem [resolvable:$true] %s208_s4 }
  0x47   : > { %p1199_p7 = pnand %p707_p13, %p1173_p11  ;;  %s196_s11 = scalar_lea.sflag [#allocation4], %s195_s18 }
  0x48   : > { %s876_s13 = scalar_lea.vmem %s209_s4, 64  ;;  %s1021_s15 = smov [#allocation3]  }
  0x49   : > { %p865_p8 = pneg %p1199_p7  ;;  %p877_p9 = scmp.ne.s32.totalorder %s209_s4, %s876_s13 }
  0x4a   : > { %s881_s10 = sshll.u32 %s1021_s15, 4  ;;  %s882_s10 = int_to_ptr.vmem [resolvable:$false] %s881_s10 }
  0x4b   : > { %p879_p12 = pnand %p877_p9, %p865_p8  ;;  %s883_s22 = scalar_lea.vmem %s882_s10, 128 }
  0x4c   : > { %p884_p3 = scmp.lt.s32.totalorder %s209_s4, %s882_s10  ;;  %p885_p1 = scmp.lt.s32.totalorder %s883_s22, %s876_s13 }
  0x4d   : > { %p880_p2 = pneg %p879_p12 }
  0x4e   : > { %p886_p4 = por %p885_p1, %p884_p3 }
  0x50   : > { %p887_p6 = pnand %p886_p4, %p880_p2 }
  0x52   : > { %890 = shalt.err (!%p887_p6)
}
  0x53   : > { %700 = dma.hbm_to_vmem [thread:$0]  (!%p1199_p7), %s206_s3, 64, %s209_s4, %s196_s11  }
  0x54   : > { %p1356_p10 = scmp.ne.s32.totalorder %s1349_s6, 0 }
  0x55   : > { %s219_s30 = sand.u32 (!%p1356_p10), 1, %s991_s19   ;;  %p1357_p11 = scmp.ne.s32.totalorder (!%p1356_p10), %s1344_s29, 0 }
  0x56   : > { %217 = sbr.rel (%p1356_p10) target bundleno = 809 (0x329), region = 36  ;;  %s645_s5 = sshll.u32 (!%p1356_p10), %s219_s30, 2 }
  0x57   : > { %s220_s14 = scalar_lea.sflag (!%p1356_p10), [#allocation4], %s219_s30  ;;  %s223_s18 = scalar_lea.vmem (!%p1356_p10), [#allocation3], %s645_s5 }
  0x5b   : > { %962 = dma.done.wait (%p1357_p11), %s220_s14, 64  }
  0x5c   : > { %964 = vsyncadd (%p1357_p11), %s220_s14, 4294967232  ;;  %p1358_p13 = scmp.ne.s32.totalorder %s1343_s28, 0 }
  0x5e   : > { %966 = dma.done.wait (%p1358_p13), [#allocation7], 576  }
  0x5f   : > { %968 = vsyncadd (%p1358_p13), [#allocation7], 4294966720  ;;  %s253_s3 = sand.u32 1, %s979_s16   ;;  %p648_p0 = scmp.ne.s32.totalorder %s999_s21, 0 }
  0x60   : > { %s1221_s4 = scalar_lea.vmem [#allocation9], %s253_s3 }
  0x61   : > { %258 = sbr.rel (%p648_p0) target bundleno = 104 (0x68), region = 52 }
  0x66   : > { %v1022_v0 = vmov 0.0  }
  0x67   : > { %259 = vst [vmem:[#allocation2] sm:$0xf] %v1022_v0 }
  0x68 PF: > { %v260_v1 = vld [vmem:[%s223_s18] sm:$0xf]  ;;  %p649_p5 = scmp.ne.s32.totalorder %s999_s21, 1 }
  0x69   : > { %s1359_s29 = sld [smem:[#allocation20_spill]] (!%p649_p5)  ;;  %s1025_s6 = smov (!%p649_p5), 32  }
  0x6d   : > { %267 = sbr.rel (%p649_p5) target bundleno = 782 (0x30e), region = 56 }
  0x6e   : > { %v261_v2 = vld [vmem:[#allocation2] sm:$0xf] }
  0x6f   : > { %v262_v3 = vadd.f32 %v261_v2, %v260_v1 }
  0x71   : > { %263 = vst [vmem:[#allocation2] sm:$0xf] %v262_v3 }
  0x72   : > { %vm270_vm0 = vcmask 1040384   ;;  %v1023_v12 = vmov 0.0   ;;  %v311_v13 = vld [vmem:[#allocation8 + $0x18] sm:$0xff]  ;;  %v310_v14 = vld [vmem:[#allocation8 + $0x10] sm:$0xff]  ;;  %v309_v15 = vld [vmem:[#allocation8 + $0x8] sm:$0xff]  ;;  %vm1024_vm1 = vmmov 0   ;;  %v399_v45 = vlaneseq }
  0x73   : > { %667 = vmatprep.subr.mxu0 %v1023_v12  ;;  %v308_v16 = vld [vmem:[#allocation8] sm:$0xff]  ;;  %675 = vmatprep.mubr.msk.f32.mxu0 %vm1024_vm1, %v1023_v12  ;;  %v268_v19 = vld [vmem:[#allocation6] sm:$0xf]  ;;  %vm313_vm2 = vcmask 261120   ;;  %v312_v37 = vld [vmem:[%s1359_s29] sm:$0x1] }
  0x74   : > { %668 = vmatpush3.msra.mxu0 %v311_v13  ;;  %v283_v21 = vrot.slane %v268_v19, 1  ;;  %v293_v24 = vrot.slane %v268_v19, 2  ;;  %v303_v27 = vrot.slane %v268_v19, 3  ;;  %v1234_v46 = vshrl.u32 %v399_v45, 7 }
  0x75   : > { %669 = vmatprep.subr.mxu0 %v1023_v12  ;;  %vm393_vm7 = vcmask 253952   ;;  %v459_v63 = vand.u32 127, %v399_v45  ;;  %vm469_vm11 = vcmask 130112   ;;  %vm476_vm12 = vcmask 195712  }
  0x76   : > { %670 = vmatpush3.msra.mxu0 %v310_v14  ;;  %v401_v47 = vsub.s32 0, %v1234_v46  ;;  %vm483_vm14 = vcmask 261312   ;;  %vm501_vm15 = vcmask 654912   ;;  %vm515_vm1 = vcmask 786112  }
  0x77   : > { %671 = vmatprep.subr.mxu0 %v1023_v12  ;;  %v464_v0 = vadd.s32 4294967288, %v459_v63  ;;  %v471_v3 = vadd.s32 4294967280, %v459_v63 }
  0x78   : > { %v269_v4 = vld [vmem:[#allocation2] ss:$4 sm:$0x1]  ;;  %v288_v6 = vld [vmem:[#allocation2 + $0x2] ss:$4 sm:$0x1]  ;;  %672 = vmatpush3.msra.mxu0 %v309_v15 }
  0x79   : > { %v271_v5 = vsel %vm270_vm0, %v269_v4, 0.0  ;;  %v289_v7 = vsel %vm270_vm0, %v288_v6, 0.0  ;;  %v277_v8 = vld [vmem:[#allocation2 + $0x1] ss:$4 sm:$0x1]  ;;  %673 = vmatprep.subr.mxu0 %v1023_v12  ;;  %v496_v4 = vadd.s32 4294967224, %v459_v63  ;;  %v467_v6 = vsub.s32 %v464_v0, %v1234_v46 }
  0x7a   : > { %272 = vadd.xlane.f32.xlu0 %v271_v5  ;;  %290 = vadd.xlane.f32.xlu1 %v289_v7  ;;  %v278_v9 = vsel %vm270_vm0, %v277_v8, 0.0  ;;  %v298_v10 = vld [vmem:[#allocation2 + $0x3] ss:$4 sm:$0x1]  ;;  %v491_v5 = vadd.s32 4294967232, %v459_v63  ;;  %v462_v7 = vsub.s32 %v459_v63, %v1234_v46  ;;  %v503_v8 = vadd.s32 4294967216, %v459_v63 }
  0x7b   : > { %v299_v11 = vsel %vm270_vm0, %v298_v10, 0.0  ;;  %674 = vmatpush3.msra.mxu0 %v308_v16  ;;  %v474_v13 = vsub.s32 %v471_v3, %v1234_v46  ;;  %v510_v15 = vadd.s32 4294967208, %v459_v63  ;;  %v499_v16 = vsub.s32 %v496_v4, %v1234_v46 }
  0x7c   : > { %vm508_vm0 = vcmask 720512  }
  0x7e   : > { %279 = vadd.xlane.f32.xlu0 %v278_v9  ;;  %300 = vadd.xlane.f32.xlu1 %v299_v11  ;;  %v478_v9 = vadd.s32 4294967272, %v459_v63 }
 0x103   : > { %v273_v17 = vpop.xlane.xlu0 %272  ;;  %v291_v18 = vpop.xlane.xlu1 %290 }
 0x104   : > { %v274_v20 = vmul.f32 0.00390625, %v273_v17  ;;  %v292_v23 = vmul.f32 0.00390625, %v291_v18  ;;  %v494_v17 = vsub.s32 %v491_v5, %v1234_v46 }
 0x106   : > { %v275_v29 = vmul.f32 %v274_v20, %v268_v19  ;;  %v295_v31 = vmul.f32 %v293_v24, %v292_v23  ;;  %v513_v24 = vsub.s32 %v510_v15, %v1234_v46 }
 0x107   : > { %v280_v22 = vpop.xlane.xlu0 %279  ;;  %v301_v26 = vpop.xlane.xlu1 %300 }
 0x108   : > { %v281_v25 = vmul.f32 0.00390625, %v280_v22  ;;  %v302_v28 = vmul.f32 0.00390625, %v301_v26  ;;  %v481_v22 = vsub.s32 %v478_v9, %v1234_v46 }
 0x10a   : > { %v285_v30 = vmul.f32 %v283_v21, %v281_v25  ;;  %v305_v33 = vmul.f32 %v303_v27, %v302_v28  ;;  %v506_v21 = vsub.s32 %v503_v8, %v1234_v46 }
 0x10c   : > { %v286_v32 = vadd.f32 %v285_v30, %v275_v29 }
 0x10e   : > { %v296_v34 = vadd.f32 %v295_v31, %v286_v32 }
 0x110   : > { %v306_v35 = vadd.f32 %v305_v33, %v296_v34 }
 0x112   : > { %v307_v36 = vmax.f32 %v306_v35, 0.0 }
 0x114   : > { %676 = vmatmul.mubr.msk.f32.vlgmr.msra.gmra.mxu0 %vm313_vm2, %v307_v36 }
 0x1d4   : > { %v383_v38 = vpop.f32.mrf.mxu0 }
 0x1d5   : > { %v384_v39 = vadd.f32 %v383_v38, %v312_v37 }
 0x1d6   : > { %v677_v40 = vpop.f32.mrf.mxu0 }
 0x1d7   : > { %v387_v41 = vsub.f32 0.0, %v384_v39 }
 0x1d9   : > { %v388_v42 = vmul.f32 1.442695, %v387_v41 }
 0x1db   : > { %807 = vpow2.f32 %v388_v42 }
 0x1e8   : > { %v808_v43 = vpop.eup %807 }
 0x1e9   : > { %v390_v44 = vadd.f32 1.0, %v808_v43 }
 0x1eb   : > { %809 = vrcp.f32 %v390_v44 }
 0x1f8   : > { %v1237_v48 = vpop.eup %809 }
 0x1f9   : > { %v402_v49 = vrot.slane %v1237_v48, %v401_v47  ;;  %v394_v62 = vsel %vm393_vm7, %v1237_v48, 0.0 }
 0x1fb   : > { %408 = vbcast.lane.b32.xlu1 %v402_v49, 264  ;;  %404 = vbcast.lane.b32.xlu0 %v402_v49, 256 }
 0x1ff   : > { %412 = vbcast.lane.b32.xlu1 %v402_v49, 272 }
 0x203   : > { %416 = vbcast.lane.b32.xlu1 %v402_v49, 280 }
 0x26d   : > { %v409_v50 = vpop.permute.xlu1 %408  ;;  %v405_v51 = vpop.permute.xlu0 %404 }
 0x26e   : > { %vm419_vm3 = vcmp.ge.f32.partialorder %v402_v49, %v409_v50  ;;  %vm418_vm4 = vcmp.ge.f32.partialorder %v402_v49, %v405_v51 }
 0x26f   : > { %v652_v52 = vsel %vm419_vm3, 1.0, %v1023_v12  ;;  %v651_v53 = vsel %vm418_vm4, 1.0, %v1023_v12  ;;  %vm519_vm3 = vcmask 523264   ;;  %vm521_vm4 = vcmask 785408  }
 0x270   : > { %v433_v54 = vsel %vm313_vm2, %v652_v52, 0.0  ;;  %v430_v55 = vsel %vm313_vm2, %v651_v53, 0.0 }
 0x271   : > { %434 = vadd.xlane.f32.xlu1 %v433_v54  ;;  %v413_v56 = vpop.permute.xlu1 %412  ;;  %431 = vadd.xlane.f32.xlu0 %v430_v55 }
 0x272   : > { %vm420_vm5 = vcmp.ge.f32.partialorder %v402_v49, %v413_v56 }
 0x273   : > { %v653_v57 = vsel %vm420_vm5, 1.0, %v1023_v12 }
 0x274   : > { %v436_v58 = vsel %vm313_vm2, %v653_v57, 0.0 }
 0x275   : > { %v417_v59 = vpop.permute.xlu1 %416  ;;  %437 = vadd.xlane.f32.xlu0 %v436_v58 }
 0x276   : > { %vm421_vm6 = vcmp.ge.f32.partialorder %v402_v49, %v417_v59 }
 0x277   : > { %v654_v60 = vsel %vm421_vm6, 1.0, %v1023_v12 }
 0x278   : > { %v439_v61 = vsel %vm313_vm2, %v654_v60, 0.0 }
 0x279   : > { %440 = vadd.xlane.f32.xlu0 %v439_v61 }
 0x27d   : > { %395 = vadd.xlane.f32.xlu0 %v394_v62 }
 0x282   : > { %488 = vrot.lane.b32.xlu1 %v1237_v48, %s1025_s6 }
 0x2fa   : > { %v435_v1 = vpop.xlane.xlu1 %434  ;;  %v432_v2 = vpop.xlane.xlu0 %431 }
 0x2fb   : > { %vm443_vm8 = vcmp.le.f32.partialorder %v435_v1, 22.0  ;;  %vm442_vm9 = vcmp.le.f32.partialorder %v432_v2, 22.0 }
 0x2fc   : > { %v656_v10 = vsel %vm443_vm8, 1.0, %v1023_v12  ;;  %v655_v11 = vsel %vm442_vm9, 1.0, %v1023_v12 }
 0x2fd   : > { %v468_v19 = vrot.slane %v656_v10, %v467_v6  ;;  %v463_v20 = vrot.slane %v655_v11, %v462_v7  ;;  %v500_v26 = vrot.slane %v656_v10, %v499_v16  ;;  %v495_v27 = vrot.slane %v655_v11, %v494_v17 }
 0x2fe   : > { %v438_v14 = vpop.xlane.xlu0 %437  ;;  %v489_v38 = vpop.permute.xlu1 %488 }
 0x2ff   : > { %vm444_vm10 = vcmp.le.f32.partialorder %v438_v14, 22.0  ;;  %v470_v29 = vsel %vm469_vm11, %v468_v19, %v463_v20  ;;  %v502_v36 = vsel %vm501_vm15, %v500_v26, %v495_v27 }
 0x300   : > { %v657_v18 = vsel %vm444_vm10, 1.0, %v1023_v12 }
 0x301   : > { %v475_v23 = vrot.slane %v657_v18, %v474_v13  ;;  %v507_v30 = vrot.slane %v657_v18, %v506_v21 }
 0x302   : > { %v441_v25 = vpop.xlane.xlu0 %440 }
 0x303   : > { %vm445_vm13 = vcmp.le.f32.partialorder %v441_v25, 22.0  ;;  %v477_v32 = vsel %vm476_vm12, %v475_v23, %v470_v29  ;;  %v509_v39 = vsel %vm508_vm0, %v507_v30, %v502_v36 }
 0x304   : > { %v658_v28 = vsel %vm445_vm13, 1.0, %v1023_v12 }
 0x305   : > { %v482_v31 = vrot.slane %v658_v28, %v481_v22  ;;  %v514_v33 = vrot.slane %v658_v28, %v513_v24 }
 0x306   : > { %v396_v35 = vpop.xlane.xlu0 %395 }
 0x307   : > { %v484_v34 = vsel %vm483_vm14, %v482_v31, %v477_v32  ;;  %v516_v40 = vsel %vm515_vm1, %v514_v33, %v509_v39  ;;  %v398_v41 = vmul.f32 0.03125, %v396_v35 }
 0x308   : > { %v486_v37 = vmul.f32 %v1237_v48, %v484_v34 }
 0x30a   : > { %v518_v12 = vsel %vm313_vm2, %v486_v37, %v489_v38 }
 0x30b   : > { %v520_v42 = vsel %vm519_vm3, %v518_v12, %v516_v40 }
 0x30c   : > { %v522_v43 = vsel %vm521_vm4, %v520_v42, %v398_v41 }
 0x30d   : > { %523 = vst [vmem:[%s1221_s4] sm:$0x1] %v522_v43 }
 0x30e PF: > { %s1360_s26 = sld [smem:[#allocation14_spill]]  ;;  %s537_s15 = sshll.u32 %s1221_s4, 4  ;;  %s538_s15 = int_to_ptr.vmem [resolvable:$true] %s537_s15 }
 0x30f   : > { %s1361_s27 = sld [smem:[#allocation15_spill]]  ;;  %s525_s10 = scalar_lea.sflag [#allocation5], %s253_s3 }
 0x310   : > { %s1362_s11 = sld [smem:[#allocation21_spill]]  ;;  %s891_s22 = scalar_lea.vmem %s538_s15, 16 }
 0x311   : > { %p892_p7 = scmp.ne.s32.totalorder %s538_s15, %s891_s22  ;;  %s1026_s30 = smov [#allocation9]  }
 0x312   : > { %s895_s5 = sshll.u32 %s1026_s30, 4  ;;  %s896_s5 = int_to_ptr.vmem [resolvable:$false] %s895_s5 }
 0x313   : > { %s897_s14 = scalar_lea.vmem %s896_s5, 32  ;;  %p898_p2 = scmp.lt.s32.totalorder %s538_s15, %s896_s5 }
 0x314   : > { %s659_s7 = sshll.u32 %s1360_s26, 4  ;;  %p899_p3 = scmp.lt.s32.totalorder %s897_s14, %s891_s22 }
 0x315   : > { %p1363_p8 = scmp.ne.s32.totalorder %s1361_s27, 0 }
 0x316   : > { %s535_s13 = scalar_lea.hbm %s1362_s11, %s659_s7  ;;  %p900_p1 = por %p899_p3, %p898_p2 }
 0x317   : > { %p893_p9 = pnand %p892_p7, %p1363_p8 }
 0x319   : > { %p894_p12 = pneg %p893_p9 }
 0x31b   : > { %p901_p4 = pnand %p900_p1, %p894_p12 }
 0x31d   : > { %904 = shalt.err (!%p901_p4)
}
 0x31e   : > { %s905_s18 = scalar_lea.hbm %s535_s13, 16  ;;  %s909_s21 = scalar_lea.hbm %s1362_s11, 32 }
 0x31f   : > { %p906_p6 = scmp.ne.s32.totalorder %s535_s13, %s905_s18  ;;  %p910_p13 = scmp.lt.s32.totalorder %s535_s13, %s1362_s11 }
 0x320   : > { %p911_p0 = scmp.lt.s32.totalorder %s909_s21, %s905_s18 }
 0x321   : > { %p907_p10 = pnand %p906_p6, %p1363_p8 }
 0x322   : > { %p912_p5 = por %p911_p0, %p910_p13 }
 0x323   : > { %p908_p11 = pneg %p907_p10 }
 0x325   : > { %p913_p7 = pnand %p912_p5, %p908_p11 }
 0x327   : > { %916 = shalt.err (!%p913_p7)
}
 0x328   : > { %688 = dma.vmem_to_hbm [thread:$0]  (%p1363_p8), %s538_s15, 16, %s535_s13, %s525_s10  }
 0x329 PF: > { %s1364_s6 = sld [smem:[#allocation13_spill]]  ;;  %p710_p9 = scmp.ge.s32.totalorder %s1015_s25, 2 }
 0x32a   : > { %s1365_s26 = sld [smem:[#allocation16_spill]] }
 0x32f   : > { %s549_s7 = sand.u32 1, %s1364_s6  }
 0x330   : > { %p1366_p12 = scmp.ne.s32.totalorder %s1365_s26, 0  ;;  %s550_s8 = scalar_lea.sflag [#allocation5], %s549_s7 }
 0x332   : > { %p702_p2 = pnand %p710_p9, %p1366_p12 }
 0x334   : > { %p703_p3 = pneg %p702_p2 }
 0x336   : > { %970 = dma.done.wait (%p703_p3), %s550_s8, 16  }
 0x337   : > { %972 = vsyncadd (%p703_p3), %s550_s8, 4294967280  ;;  %s21_s25 = sadd.s32 1, %s1015_s25   ;;  %s1367_s27 = sld [smem:[#allocation17_spill]] }
 0x338   : > { %p18_p1 = scmp.ge.s32.totalorder %s21_s25, 6   ;;  %s1368_s15 = smov %s979_s16 }
 0x339   : > { %s1369_s16 = smov %s983_s17  ;;  %s1370_s17 = smov %s1186_s1 }
 0x33a   : > { %s1371_s18 = smov %s991_s19  ;;  %s1372_s19 = smov %s995_s20 }
 0x33b   : > { %s1373_s20 = smov %s1189_s2  ;;  %s1374_s21 = smov %s1007_s23 }
 0x33c   : > { %s1375_s22 = smov %s1011_s24  ;;  %s1377_s24 = smov %s1383_s12 }
 0x33d   : > { %s1376_s23 = smov %s1367_s27  ;;  %20 = sbr.rel (!%p18_p1) target bundleno = 15 (0xf), region = 100 }
 0x342   :  { %554 = vsyncpa [#allocation4], 1 }
 0x343   :  { %556 = vsyncpa [#allocation4 + $0x1], 1 }
 0x344   :  { %557 = vsyncpa [#allocation7], 1 }
 0x345   :  { %558 = vsyncpa [#allocation5], 1 }
 0x346   :  { %560 = vsyncpa [#allocation5 + $0x1], 1 }

</bundles_post_ra>
